<compile_context>
chip_gen: v6e
topology: v6e:2x2x1
jax: 0.10.0
libtpu: 0.0.40
codegen_flags: <defaults>
</compile_context>

<pallas_src>
import math

import jax
import jax.numpy as jnp
from jax import lax
from jax.experimental import pallas as pl
from jax.experimental.pallas import tpu as pltpu

IN_FEATURES = 82
LAYER_DIMS = [(64, IN_FEATURES), (8, 64), (4, 8), (1, 4)]   # (out, in), PyTorch order
TB_MAX = 8192                                               # batch rows per grid step


def _mlp_kernel(x_ref,
                w1_ref, b1_ref,
                w2_ref, b2_ref,
                w3_ref, b3_ref,
                w4_ref, b4_ref,
                o_ref):
    """Forward pass for one batch tile, computed feature-major (features on
    sublanes, batch on lanes) so every intermediate is lane-dense and the
    result is a lane-dense (1, tb) row."""
    x = x_ref[...]                                            # (tb, 82) f32

    # fc1: h1[o, t] = sum_k w1[o, k] * x[t, k]  ->  (64, tb)   (NT matmul, K=82)
    h = lax.dot_general(w1_ref[...], x, (((1,), (1,)), ((), ())),
                        preferred_element_type=jnp.float32)
    h = jnp.maximum(h + b1_ref[...], 0.0)

    # fc2: (8, 64) @ (64, tb) -> (8, tb)
    h = lax.dot_general(w2_ref[...], h, (((1,), (0,)), ((), ())),
                        preferred_element_type=jnp.float32)
    h = jnp.maximum(h + b2_ref[...], 0.0)

    # fc3: (4, 8) @ (8, tb) -> (4, tb)
    h = lax.dot_general(w3_ref[...], h, (((1,), (0,)), ((), ())),
                        preferred_element_type=jnp.float32)
    h = jnp.maximum(h + b3_ref[...], 0.0)

    # fc4 (no activation): (1, 4) @ (4, tb) -> (1, tb), lane-dense
    h = lax.dot_general(w4_ref[...], h, (((1,), (0,)), ((), ())),
                        preferred_element_type=jnp.float32)
    o_ref[...] = (h + b4_ref[...]).astype(o_ref.dtype)


def predictor_forward(x, params, *, tb_max=TB_MAX):
    """x: (batch, 82) float32.  params: PyTorch-layout weights w_i (out, in),
    biases b_i (out,).  Returns (batch, 1) float32."""
    batch, feat = x.shape
    assert feat == IN_FEATURES, feat
    x = x.astype(jnp.float32)

    # Batch tile: a single block for small batches (block dims == array dims
    # are always legal); otherwise a 128-multiple tile so the lane-dense
    # (1, tb) output block satisfies the (8, 128) rule.  The last block may be
    # partial: reads are clamped, writes masked -> no wrapper-side padding.
    if batch <= tb_max:
        tb = batch
    else:
        tb = max(128, (tb_max // 128) * 128)
    num_blocks = pl.cdiv(batch, tb)

    # Weights (PyTorch (out, in) orientation) and biases as (out, 1) columns
    # (broadcast over the lane/batch axis).  All f32: compute is free here.
    w1 = params["w1"].astype(jnp.float32)
    w2 = params["w2"].astype(jnp.float32)
    w3 = params["w3"].astype(jnp.float32)
    w4 = params["w4"].astype(jnp.float32)
    b1 = params["b1"].reshape(-1, 1).astype(jnp.float32)
    b2 = params["b2"].reshape(-1, 1).astype(jnp.float32)
    b3 = params["b3"].reshape(-1, 1).astype(jnp.float32)
    b4 = params["b4"].reshape(-1, 1).astype(jnp.float32)

    # x stream: deeper pipelining when there are enough steps to exploit it.
    x_spec_kwargs = {}
    if num_blocks >= 3:
        x_spec_kwargs = dict(pipeline_mode=pl.Buffered(3))

    const = lambda i: (0, 0)    # weights/biases: VMEM-resident, never re-fetched
    in_specs = [
        pl.BlockSpec((tb, IN_FEATURES), lambda i: (i, 0), **x_spec_kwargs),
        pl.BlockSpec(w1.shape, const), pl.BlockSpec(b1.shape, const),
        pl.BlockSpec(w2.shape, const), pl.BlockSpec(b2.shape, const),
        pl.BlockSpec(w3.shape, const), pl.BlockSpec(b3.shape, const),
        pl.BlockSpec(w4.shape, const), pl.BlockSpec(b4.shape, const),
    ]
    out_specs = pl.BlockSpec((1, tb), lambda i: (0, i))     # lane-dense output row
    out_shape = jax.ShapeDtypeStruct((1, batch), jnp.float32)

    # True (unpadded) traffic for XLA's scheduler.
    flops = 2 * batch * sum(o * i for o, i in LAYER_DIMS)
    bytes_accessed = (batch * IN_FEATURES * 4          # x read
                      + batch * 4                      # out write
                      + sum(4 * (o * i + o) for o, i in LAYER_DIMS))
    cost = pl.CostEstimate(flops=flops, transcendentals=0,
                           bytes_accessed=bytes_accessed)

    out = pl.pallas_call(
        _mlp_kernel,
        out_shape=out_shape,
        grid=(num_blocks,),
        in_specs=in_specs,
        out_specs=out_specs,
        compiler_params=pltpu.CompilerParams(
            dimension_semantics=("parallel",),
            vmem_limit_bytes=48 * 1024 * 1024),
        cost_estimate=cost,
    )(x, w1, b1, w2, b2, w3, b3, w4, b4)

    # (1, batch) row-major == (batch, 1) row-major: free reshape.
    return out.reshape(batch, 1)


def init_params(key):
    """nn.Linear-style init: U(-1/sqrt(fan_in), 1/sqrt(fan_in)); PyTorch layout."""
    params = {}
    for idx, (fan_out, fan_in) in enumerate(LAYER_DIMS, start=1):
        key, kw, kb = jax.random.split(key, 3)
        bound = 1.0 / math.sqrt(fan_in)
        params[f"w{idx}"] = jax.random.uniform(
            kw, (fan_out, fan_in), jnp.float32, minval=-bound, maxval=bound)
        params[f"b{idx}"] = jax.random.uniform(
            kb, (fan_out,), jnp.float32, minval=-bound, maxval=bound)
    return params


def reference_forward(x, params):
    """Plain-JAX f32 reference of the PyTorch forward."""
    h = jnp.maximum(x @ params["w1"].T + params["b1"], 0.0)
    h = jnp.maximum(h @ params["w2"].T + params["b2"], 0.0)
    h = jnp.maximum(h @ params["w3"].T + params["b3"], 0.0)
    return (h @ params["w4"].T + params["b4"]).reshape(-1, 1)


if __name__ == "__main__":
    key = jax.random.PRNGKey(0)
    key, kx1, kx2 = jax.random.split(key, 3)
    params = init_params(key)

    # Test 1: small batch, single block (block dims == array dims).
    batch1 = 8
    x1 = jax.random.normal(kx1, (batch1, IN_FEATURES), dtype=jnp.float32)
    out1 = jax.block_until_ready(predictor_forward(x1, params))
    ref1 = reference_forward(x1, params)
    assert out1.shape == (batch1, 1), out1.shape
    assert jnp.allclose(out1, ref1, atol=2e-2, rtol=2e-2), (out1, ref1)

    # Test 2: multi-block grid with a partial last block and Buffered(3)
    # pipelining on the x stream (tb forced small so the path is exercised).
    batch2 = 300
    x2 = jax.random.normal(kx2, (batch2, IN_FEATURES), dtype=jnp.float32)
    out2 = jax.block_until_ready(predictor_forward(x2, params, tb_max=128))
    ref2 = reference_forward(x2, params)
    assert out2.shape == (batch2, 1), out2.shape
    assert jnp.allclose(out2, ref2, atol=2e-2, rtol=2e-2), (out2, ref2)

    print("KERNEL_OK")
</pallas_src>

<mosaic_0001>
module attributes {stable_mosaic.version = 11 : i64} {
  func.func @_mlp_kernel(%arg0: i32, %arg1: memref<8x82xf32, #tpu.memory_space<vmem>>, %arg2: memref<64x82xf32, #tpu.memory_space<vmem>>, %arg3: memref<64x1xf32, #tpu.memory_space<vmem>>, %arg4: memref<8x64xf32, #tpu.memory_space<vmem>>, %arg5: memref<8x1xf32, #tpu.memory_space<vmem>>, %arg6: memref<4x8xf32, #tpu.memory_space<vmem>>, %arg7: memref<4x1xf32, #tpu.memory_space<vmem>>, %arg8: memref<1x4xf32, #tpu.memory_space<vmem>>, %arg9: memref<1x1xf32, #tpu.memory_space<vmem>>, %arg10: memref<1x8xf32, #tpu.memory_space<vmem>>) attributes {dimension_semantics = [#tpu.dimension_semantics<parallel>], iteration_bounds = array<i64: 1>, scalar_prefetch = 0 : i64, scratch_operands = 0 : i64, tpu.core_type = #tpu.core_type<tc>, window_params = [{transform_indices = @transform_0, window_bounds = array<i64: 8, 82>}, {pipeline_mode = #tpu.pipeline_mode<synchronous>, transform_indices = @transform_1, window_bounds = array<i64: 64, 82>}, {pipeline_mode = #tpu.pipeline_mode<synchronous>, transform_indices = @transform_2, window_bounds = array<i64: 64, 1>}, {pipeline_mode = #tpu.pipeline_mode<synchronous>, transform_indices = @transform_3, window_bounds = array<i64: 8, 64>}, {pipeline_mode = #tpu.pipeline_mode<synchronous>, transform_indices = @transform_4, window_bounds = array<i64: 8, 1>}, {pipeline_mode = #tpu.pipeline_mode<synchronous>, transform_indices = @transform_5, window_bounds = array<i64: 4, 8>}, {pipeline_mode = #tpu.pipeline_mode<synchronous>, transform_indices = @transform_6, window_bounds = array<i64: 4, 1>}, {pipeline_mode = #tpu.pipeline_mode<synchronous>, transform_indices = @transform_7, window_bounds = array<i64: 1, 4>}, {pipeline_mode = #tpu.pipeline_mode<synchronous>, transform_indices = @transform_8, window_bounds = array<i64: 1, 1>}, {transform_indices = @transform_9, window_bounds = array<i64: 1, 8>}]} {
    %c0 = arith.constant 0 : index
    %c0_0 = arith.constant 0 : index
    %0 = vector.load %arg1[%c0, %c0_0] : memref<8x82xf32, #tpu.memory_space<vmem>>, vector<8x82xf32>
    %c0_1 = arith.constant 0 : index
    %c0_2 = arith.constant 0 : index
    %1 = vector.load %arg2[%c0_1, %c0_2] : memref<64x82xf32, #tpu.memory_space<vmem>>, vector<64x82xf32>
    %cst = arith.constant dense<0.000000e+00> : vector<64x8xf32>
    %2 = tpu.matmul %1, %0, %cst {dimension_numbers = #tpu.dot_dimension_numbers<[1], [1], [0], [0], [0, 0, 1, 0], [], []>} : vector<64x82xf32>, vector<8x82xf32>, vector<64x8xf32> -> vector<64x8xf32>
    %c0_3 = arith.constant 0 : index
    %c0_4 = arith.constant 0 : index
    %3 = vector.load %arg3[%c0_3, %c0_4] : memref<64x1xf32, #tpu.memory_space<vmem>>, vector<64x1xf32>
    %4 = vector.broadcast %3 : vector<64x1xf32> to vector<64x8xf32>
    %5 = arith.addf %2, %4 : vector<64x8xf32>
    %cst_5 = arith.constant 0.000000e+00 : f32
    %6 = vector.broadcast %cst_5 : f32 to vector<64x8xf32>
    %7 = arith.maximumf %5, %6 : vector<64x8xf32>
    %c0_6 = arith.constant 0 : index
    %c0_7 = arith.constant 0 : index
    %8 = vector.load %arg4[%c0_6, %c0_7] : memref<8x64xf32, #tpu.memory_space<vmem>>, vector<8x64xf32>
    %cst_8 = arith.constant dense<0.000000e+00> : vector<8x8xf32>
    %9 = tpu.matmul %8, %7, %cst_8 {dimension_numbers = #tpu.dot_dimension_numbers<[1], [0], [0], [1], [0, 0, 1, 1], [], []>} : vector<8x64xf32>, vector<64x8xf32>, vector<8x8xf32> -> vector<8x8xf32>
    %c0_9 = arith.constant 0 : index
    %c0_10 = arith.constant 0 : index
    %10 = vector.load %arg5[%c0_9, %c0_10] : memref<8x1xf32, #tpu.memory_space<vmem>>, vector<8x1xf32>
    %11 = vector.broadcast %10 : vector<8x1xf32> to vector<8x8xf32>
    %12 = arith.addf %9, %11 : vector<8x8xf32>
    %cst_11 = arith.constant 0.000000e+00 : f32
    %13 = vector.broadcast %cst_11 : f32 to vector<8x8xf32>
    %14 = arith.maximumf %12, %13 : vector<8x8xf32>
    %c0_12 = arith.constant 0 : index
    %c0_13 = arith.constant 0 : index
    %15 = vector.load %arg6[%c0_12, %c0_13] : memref<4x8xf32, #tpu.memory_space<vmem>>, vector<4x8xf32>
    %cst_14 = arith.constant dense<0.000000e+00> : vector<4x8xf32>
    %16 = tpu.matmul %15, %14, %cst_14 {dimension_numbers = #tpu.dot_dimension_numbers<[1], [0], [0], [1], [0, 0, 1, 1], [], []>} : vector<4x8xf32>, vector<8x8xf32>, vector<4x8xf32> -> vector<4x8xf32>
    %c0_15 = arith.constant 0 : index
    %c0_16 = arith.constant 0 : index
    %17 = vector.load %arg7[%c0_15, %c0_16] : memref<4x1xf32, #tpu.memory_space<vmem>>, vector<4x1xf32>
    %18 = vector.broadcast %17 : vector<4x1xf32> to vector<4x8xf32>
    %19 = arith.addf %16, %18 : vector<4x8xf32>
    %cst_17 = arith.constant 0.000000e+00 : f32
    %20 = vector.broadcast %cst_17 : f32 to vector<4x8xf32>
    %21 = arith.maximumf %19, %20 : vector<4x8xf32>
    %c0_18 = arith.constant 0 : index
    %c0_19 = arith.constant 0 : index
    %22 = vector.load %arg8[%c0_18, %c0_19] : memref<1x4xf32, #tpu.memory_space<vmem>>, vector<1x4xf32>
    %cst_20 = arith.constant dense<0.000000e+00> : vector<1x8xf32>
    %23 = tpu.matmul %22, %21, %cst_20 {dimension_numbers = #tpu.dot_dimension_numbers<[1], [0], [0], [1], [0, 0, 1, 1], [], []>} : vector<1x4xf32>, vector<4x8xf32>, vector<1x8xf32> -> vector<1x8xf32>
    %c0_21 = arith.constant 0 : index
    %c0_22 = arith.constant 0 : index
    %24 = vector.load %arg9[%c0_21, %c0_22] : memref<1x1xf32, #tpu.memory_space<vmem>>, vector<1x1xf32>
    %25 = vector.broadcast %24 : vector<1x1xf32> to vector<1x8xf32>
    %26 = arith.addf %23, %25 : vector<1x8xf32>
    %c0_23 = arith.constant 0 : index
    %c0_24 = arith.constant 0 : index
    %27 = vector.load %arg10[%c0_23, %c0_24] : memref<1x8xf32, #tpu.memory_space<vmem>>, vector<1x8xf32>
    tpu.vector_store %arg10[%c0_23, %c0_24], %26 {strides = array<i32>} : memref<1x8xf32, #tpu.memory_space<vmem>>, vector<1x8xf32>,
    return
  }
  func.func @transform_0(%arg0: i32) -> (i32, i32) {
    %c0_i32 = arith.constant 0 : i32
    %c0_i32_0 = arith.constant 0 : i32
    return %arg0, %c0_i32 : i32, i32
  }
  func.func @transform_1(%arg0: i32) -> (i32, i32) {
    %c0_i32 = arith.constant 0 : i32
    %c0_i32_0 = arith.constant 0 : i32
    %c0_i32_1 = arith.constant 0 : i32
    return %c0_i32, %c0_i32_0 : i32, i32
  }
  func.func @transform_2(%arg0: i32) -> (i32, i32) {
    %c0_i32 = arith.constant 0 : i32
    %c0_i32_0 = arith.constant 0 : i32
    %c0_i32_1 = arith.constant 0 : i32
    return %c0_i32, %c0_i32_0 : i32, i32
  }
  func.func @transform_3(%arg0: i32) -> (i32, i32) {
    %c0_i32 = arith.constant 0 : i32
    %c0_i32_0 = arith.constant 0 : i32
    %c0_i32_1 = arith.constant 0 : i32
    return %c0_i32, %c0_i32_0 : i32, i32
  }
  func.func @transform_4(%arg0: i32) -> (i32, i32) {
    %c0_i32 = arith.constant 0 : i32
    %c0_i32_0 = arith.constant 0 : i32
    %c0_i32_1 = arith.constant 0 : i32
    return %c0_i32, %c0_i32_0 : i32, i32
  }
  func.func @transform_5(%arg0: i32) -> (i32, i32) {
    %c0_i32 = arith.constant 0 : i32
    %c0_i32_0 = arith.constant 0 : i32
    %c0_i32_1 = arith.constant 0 : i32
    return %c0_i32, %c0_i32_0 : i32, i32
  }
  func.func @transform_6(%arg0: i32) -> (i32, i32) {
    %c0_i32 = arith.constant 0 : i32
    %c0_i32_0 = arith.constant 0 : i32
    %c0_i32_1 = arith.constant 0 : i32
    return %c0_i32, %c0_i32_0 : i32, i32
  }
  func.func @transform_7(%arg0: i32) -> (i32, i32) {
    %c0_i32 = arith.constant 0 : i32
    %c0_i32_0 = arith.constant 0 : i32
    %c0_i32_1 = arith.constant 0 : i32
    return %c0_i32, %c0_i32_0 : i32, i32
  }
  func.func @transform_8(%arg0: i32) -> (i32, i32) {
    %c0_i32 = arith.constant 0 : i32
    %c0_i32_0 = arith.constant 0 : i32
    %c0_i32_1 = arith.constant 0 : i32
    return %c0_i32, %c0_i32_0 : i32, i32
  }
  func.func @transform_9(%arg0: i32) -> (i32, i32) {
    %c0_i32 = arith.constant 0 : i32
    %c0_i32_0 = arith.constant 0 : i32
    return %c0_i32, %arg0 : i32, i32
  }
}

</mosaic_0001>

<bundles_post_ra>
// kernel: tpu_custom_call.1
= control target key start
LH: loop header
LB: loop body
LE: loop exit
PB: predicated region body
PF: predicated region fallthrough
CT: control target
= control target key end

     0   :  { %s747_s0 = inlined_call_operand.vmem [shape: f32[8,82], index: 0, kind: input, shape index: {}]   ;;  %s748_s1 = inlined_call_operand.vmem [shape: f32[64,82], index: 1, kind: input, shape index: {}]   ;;  %s749_s2 = inlined_call_operand.vmem [shape: f32[64,1], index: 2, kind: input, shape index: {}]   ;;  %s750_s3 = inlined_call_operand.vmem [shape: f32[8,64], index: 3, kind: input, shape index: {}]   ;;  %s751_s4 = inlined_call_operand.vmem [shape: f32[8,1], index: 4, kind: input, shape index: {}]   ;;  %s752_s5 = inlined_call_operand.vmem [shape: f32[4,8], index: 5, kind: input, shape index: {}]   ;;  %s753_s6 = inlined_call_operand.vmem [shape: f32[4,1], index: 6, kind: input, shape index: {}]   ;;  %s754_s7 = inlined_call_operand.vmem [shape: f32[1,4], index: 7, kind: input, shape index: {}]   ;;  %s755_s8 = inlined_call_operand.<no memory space> [shape: f32[1,1], index: 8, kind: input, shape index: {}]   ;;  %s756_s9 = inlined_call_operand.hbm [shape: f32[1,8], index: 9, kind: output, shape index: {}]  }
   0x1   :  { %v14_v0 = vstv %s755_s8 }
   0x2   :  { %15 = vst [vmem:[#allocation2] sm:$0x1] %v14_v0 }
   0x3   :  { %v35_v1 = vld [vmem:[%s747_s0] sm:$0xff]  ;;  %vm92_vm0 = vcmask 670720   ;;  %v37_v3 = vld [vmem:[%s748_s1 + $0x8] sm:$0xff]  ;;  %v608_v4 = vmov 0   ;;  %v38_v5 = vld [vmem:[%s748_s1 + $0x10] sm:$0xff] }
   0x4   :  { %v36_v2 = vld [vmem:[%s748_s1] sm:$0xff]  ;;  %537 = vmatprep.subr.msk.mxu0 %vm92_vm0, %v35_v1  ;;  %584 = vset.pattern.permute.xlu0 %v608_v4  ;;  %v51_v6 = vld [vmem:[%s749_s2 + $0x38] sm:$0xff]  ;;  %v49_v7 = vld [vmem:[%s749_s2 + $0x28] sm:$0xff] }
   0x5   :  { %539 = vmatprep.mubr.msk.f32.mxu0 %vm92_vm0, %v36_v2  ;;  %538 = vmatpush3.xpose.msk.msra.mxu0 %vm92_vm0, %v35_v1  ;;  %v50_v8 = vld [vmem:[%s749_s2 + $0x30] sm:$0xff]  ;;  %v48_v9 = vld [vmem:[%s749_s2 + $0x20] sm:$0xff]  ;;  %v39_v10 = vld [vmem:[%s748_s1 + $0x18] sm:$0xff] }
   0x6   :  { %585 = vset.pattern.permute.xlu1 %v608_v4  ;;  %89 = vperm.xlu0 %584, %v51_v6  }
   0x7   :  { %79 = vperm.xlu1 %585, %v49_v7  }
   0x8   :  { %540 = vmatmul.mubr.msk.f32.vlgmr.msra.gmra.mxu0 %vm92_vm0, %v37_v3 }
   0x9   :  { %542 = vmatprep.mubr.msk.f32.mxu0 %vm92_vm0, %v38_v5 }
   0xa   :  { %16 = vsyncpa [#allocation4], 0  ;;  %v40_v11 = vld [vmem:[%s748_s1 + $0x20] sm:$0xff]  ;;  %84 = vperm.xlu0 %584, %v50_v8   ;;  %v47_v12 = vld [vmem:[%s749_s2 + $0x18] sm:$0xff]  ;;  %v609_v22 = vmov 0.0   ;;  %vm610_vm1 = vmmov 0   ;;  %v404_v4 = vlaneseq }
   0xb   :  { %74 = vperm.xlu1 %585, %v48_v9   ;;  %v46_v13 = vld [vmem:[%s749_s2 + $0x10] sm:$0xff]  ;;  %v41_v14 = vld [vmem:[%s748_s1 + $0x28] sm:$0xff]  ;;  %v44_v17 = vld [vmem:[%s749_s2] sm:$0xff]  ;;  %551 = vmatprep.subr.mxu1 %v609_v22  ;;  %vm240_vm2 = vcmask 523264   ;;  %vm322_vm3 = vcmask 64512   ;;  %vm412_vm4 = vcmask 1043456  }
   0xc   :  { %543 = vmatmul.mubr.msk.f32.gmra.mxu0 %vm92_vm0, %v39_v10  ;;  %v42_v15 = vld [vmem:[%s748_s1 + $0x30] sm:$0xff]  ;;  %v45_v16 = vld [vmem:[%s749_s2 + $0x8] sm:$0xff]  ;;  %v43_v18 = vld [vmem:[%s748_s1 + $0x38] sm:$0xff]  ;;  %570 = vmatprep.subr.mxu0 %v609_v22  ;;  %vm408_vm5 = vcmask 31744   ;;  %v405_v5 = vshrl.u32 %v404_v4, 7  ;;  %vm486_vm6 = vcmask 57344  }
   0xd   :  { %545 = vmatprep.mubr.msk.f32.mxu0 %vm92_vm0, %v40_v11  ;;  %v234_v19 = vld [vmem:[%s751_s4] sm:$0xff]  ;;  %567 = vmatprep.mubr.msk.f32.mxu1 %vm610_vm1, %v609_v22 }
   0xe   :  { %69 = vperm.xlu0 %584, %v47_v12   ;;  %v316_v20 = vld [vmem:[%s753_s6] sm:$0xf]  ;;  %v406_v6 = vsub.s32 0, %v405_v5 }
   0xf   :  { %64 = vperm.xlu1 %585, %v46_v13   ;;  %v398_v21 = vld [vmem:[#allocation2] sm:$0x1] }
  0x10   :  { %546 = vmatmul.mubr.msk.f32.gmra.mxu0 %vm92_vm0, %v41_v14  ;;  %v233_v55 = vld [vmem:[%s750_s3] sm:$0xff] }
  0x11   :  { %548 = vmatprep.mubr.msk.f32.mxu0 %vm92_vm0, %v42_v15  ;;  %v315_v61 = vld [vmem:[%s752_s5] sm:$0xf]  ;;  %s611_s5 = smov [#allocation3]  }
  0x12   :  { %59 = vperm.xlu0 %584, %v45_v16   ;;  %v397_v3 = vld [vmem:[%s754_s7] sm:$0x1]  ;;  %s494_s25 = sshll.u32 %s611_s5, 4  ;;  %s495_s25 = int_to_ptr.vmem [resolvable:$true] %s494_s25 }
  0x13   :  { %54 = vperm.xlu1 %585, %v44_v17   ;;  %s586_s26 = scalar_lea.vmem %s495_s25, 16  ;;  %s590_s27 = scalar_lea.vmem %s495_s25, 32 }
  0x14   :  { %549 = vmatmul.mubr.msk.f32.gmra.mxu0 %vm92_vm0, %v43_v18  ;;  %p587_p0 = scmp.ne.s32.totalorder %s495_s25, %s586_s26  ;;  %p591_p1 = scmp.lt.s32.totalorder %s495_s25, %s495_s25 }
  0x15   :  { %572 = vmatprep.mubr.msk.f32.mxu0 %vm610_vm1, %v609_v22  ;;  %p592_p2 = scmp.lt.s32.totalorder %s590_s27, %s586_s26 }
  0x16   :  { %237 = vperm.xlu0 %584, %v234_v19  }
  0x17   :  { %319 = vperm.xlu1 %585, %v316_v20   ;;  %p593_p3 = por %p592_p2, %p591_p1 }
  0x19   :  { %p594_p4 = pnand %p593_p3, %p587_p0 }
  0x1a   :  { %401 = vperm.xlu0 %584, %v398_v21  }
  0x81   :  { %v90_v24 = vpop.permute.xlu0 %89 }
  0x82   :  { %v80_v26 = vpop.permute.xlu1 %79 }
  0x85   :  { %v85_v29 = vpop.permute.xlu0 %84 }
  0x86   :  { %v75_v31 = vpop.permute.xlu1 %74 }
  0x89   :  { %v70_v35 = vpop.permute.xlu0 %69 }
  0x8a   :  { %v65_v40 = vpop.permute.xlu1 %64 }
  0x8d   :  { %v60_v45 = vpop.permute.xlu0 %59 }
  0x8e   :  { %v55_v48 = vpop.permute.xlu1 %54 }
  0x91   :  { %v238_v56 = vpop.permute.xlu0 %237 }
  0x92   :  { %v320_v62 = vpop.permute.xlu1 %319 }
  0x95   :  { %v402_v7 = vpop.permute.xlu0 %401 }
  0x96   :  { %v407_v8 = vrot.slane %v402_v7, %v406_v6 }
  0xc8   :  { %v541_v23 = vpop.f32.mrf.mxu0 }
  0xc9   :  { %v192_v49 = vadd.f32 %v541_v23, %v60_v45 }
  0xca   :  { %v186_v25 = vpop.f32.mrf.mxu0 }
  0xcb   :  { %v187_v51 = vadd.f32 %v186_v25, %v55_v48  ;;  %v226_v53 = vmax.f32 %v192_v49, 0.0 }
  0xcc   :  { %v544_v27 = vpop.f32.mrf.mxu0 }
  0xcd   :  { %v202_v43 = vadd.f32 %v544_v27, %v70_v35  ;;  %v225_v54 = vmax.f32 %v187_v51, 0.0 }
  0xce   :  { %v196_v28 = vpop.f32.mrf.mxu0 }
  0xcf   :  { %v197_v46 = vadd.f32 %v196_v28, %v65_v40  ;;  %v228_v50 = vmax.f32 %v202_v43, 0.0 }
  0xd0   :  { %v547_v30 = vpop.f32.mrf.mxu0 }
  0xd1   :  { %v212_v37 = vadd.f32 %v547_v30, %v80_v26  ;;  %v227_v52 = vmax.f32 %v197_v46, 0.0 }
  0xd2   :  { %v206_v32 = vpop.f32.mrf.mxu0 }
  0xd3   :  { %v207_v41 = vadd.f32 %v206_v32, %v75_v31  ;;  %v230_v44 = vmax.f32 %v212_v37, 0.0 }
  0xd4   :  { %v550_v33 = vpop.f32.mrf.mxu0 }
  0xd5   :  { %v222_v34 = vadd.f32 %v550_v33, %v90_v24  ;;  %v229_v47 = vmax.f32 %v207_v41, 0.0 }
  0xd6   :  { %v216_v36 = vpop.f32.mrf.mxu0 }
  0xd7   :  { %v232_v38 = vmax.f32 %v222_v34, 0.0  ;;  %v217_v39 = vadd.f32 %v216_v36, %v85_v29 }
  0xd9   :  { %v231_v42 = vmax.f32 %v217_v39, 0.0  ;;  %552 = vmatpush3.msra.mxu1 %v232_v38 }
  0xda   :  { %553 = vmatprep.subr.mxu1 %v609_v22 }
  0xdb   :  { %554 = vmatpush3.msra.mxu1 %v231_v42 }
  0xdc   :  { %555 = vmatprep.subr.mxu1 %v609_v22 }
  0xdd   :  { %556 = vmatpush3.msra.mxu1 %v230_v44 }
  0xde   :  { %557 = vmatprep.subr.mxu1 %v609_v22 }
  0xdf   :  { %558 = vmatpush3.msra.mxu1 %v229_v47 }
  0xe0   :  { %559 = vmatprep.subr.mxu1 %v609_v22 }
  0xe1   :  { %560 = vmatpush3.msra.mxu1 %v228_v50 }
  0xe2   :  { %561 = vmatprep.subr.mxu1 %v609_v22 }
  0xe3   :  { %562 = vmatpush3.msra.mxu1 %v227_v52 }
  0xe4   :  { %563 = vmatprep.subr.mxu1 %v609_v22 }
  0xe5   :  { %564 = vmatpush3.msra.mxu1 %v226_v53 }
  0xe6   :  { %565 = vmatprep.subr.mxu1 %v609_v22 }
  0xe7   :  { %566 = vmatpush3.msra.mxu1 %v225_v54 }
  0xe8   :  { %568 = vmatmul.mubr.msk.f32.vlgmr.msra.gmra.mxu1 %vm240_vm2, %v233_v55  ;;  %575 = vmatprep.subr.mxu1 %v609_v22 }
  0xe9   :  { %577 = vmatprep.mubr.msk.f32.mxu1 %vm610_vm1, %v609_v22 }
 0x1a8   :  { %v310_v57 = vpop.f32.mrf.mxu1 }
 0x1a9   :  { %v311_v58 = vadd.f32 %v310_v57, %v238_v56 }
 0x1aa   :  { %v569_v59 = vpop.f32.mrf.mxu1 }
 0x1ab   :  { %v314_v60 = vmax.f32 %v311_v58, 0.0 }
 0x1ad   :  { %571 = vmatpush3.msra.mxu0 %v314_v60 }
 0x1ae   :  { %573 = vmatmul.mubr.msk.f32.vlgmr.msra.gmra.mxu0 %vm322_vm3, %v315_v61 }
 0x26e   :  { %v392_v63 = vpop.f32.mrf.mxu0 }
 0x26f   :  { %v393_v0 = vadd.f32 %v392_v63, %v320_v62 }
 0x270   :  { %v574_v1 = vpop.f32.mrf.mxu0 }
 0x271   :  { %v396_v2 = vmax.f32 %v393_v0, 0.0 }
 0x273   :  { %576 = vmatpush3.msk.msra.mxu1 %vm412_vm4, %v396_v2 }
 0x274   :  { %578 = vmatmul.mubr.msk.f32.vlgmr.msra.gmra.mxu1 %vm408_vm5, %v397_v3 }
 0x334   :  { %v482_v9 = vpop.f32.mrf.mxu1 }
 0x335   :  { %v483_v10 = vadd.f32 %v482_v9, %v407_v8 }
 0x336   :  { %v579_v11 = vpop.f32.mrf.mxu1 }
 0x337   :  { %487 = vst.msk [vmem:[#allocation3] sm:$0x1] %vm486_vm6, %v483_v10 }
 0x338   :  { %597 = shalt.err (!%p594_p4)
}
 0x339   :  { %497 = dma.vmem_to_hbm [thread:$0]  %s495_s25, 16, %s756_s9, [#allocation4]  }
 0x33a   :  { %606 = dma.done.wait [#allocation4], 16  }
 0x33b   :  { %607 = vsyncadd [#allocation4], 4294967280 }
 0x33c   :  { %501 = vsyncpa [#allocation4], 1 }

</bundles_post_ra>
